<compile_context>
chip_gen: v5e
topology: v5e:2x2
jax: 0.10.0
libtpu: 0.0.40
codegen_flags: <defaults>
</compile_context>

<pallas_src>
import functools

import jax
import jax.numpy as jnp
from jax.experimental import pallas as pl
from jax.experimental.pallas import tpu as pltpu


def _round_up(x, mult):
    return ((x + mult - 1) // mult) * mult


def _select_hw_config():
    """Generation-aware tile targets + scoped-VMEM limit.

    v5e / v6e: 128 MiB physical VMEM  -> big K tiles, 64 MiB scoped limit.
    v7x:        64 MiB per TensorCore -> cap tile growth / limit to 48 MiB.
    Falls back to the conservative (v7x-safe) config if the query fails.
    """
    vmem_cap = None
    try:
        info = pltpu.get_tpu_info()
        vmem_cap = getattr(info, "vmem_capacity_bytes", None)
    except Exception:
        vmem_cap = None
    if vmem_cap is not None and vmem_cap >= 96 * 1024 * 1024:
        # v5e / v6e: 512x1024 output tile, tk=1024.
        # f32 double-buffered footprint ~= 18 MiB, well under the 64 MiB limit.
        return 512, 1024, 1024, 64 * 1024 * 1024
    # v7x (or unknown): 512x1024 output tile, tk=512 (~12 MiB f32 double-buffered).
    return 512, 1024, 512, 48 * 1024 * 1024


_TM, _TN, _TK, _VMEM_LIMIT = _select_hw_config()


def _matmul_bias_kernel(x_ref, w_ref, b_ref, o_ref, acc_ref):
    """y[i,j] = b[j] + sum_k x[i,k] @ w[k,j], f32 accumulation.

    The f32 bias is folded into the k==0 accumulator init, so there is no
    zero-fill store and no separate read-modify-write add at finalize.
    """
    @pl.when(pl.program_id(2) == 0)
    def _init():
        acc_ref[...] = jnp.broadcast_to(b_ref[...], acc_ref.shape)

    acc_ref[...] += jnp.dot(x_ref[...], w_ref[...],
                            preferred_element_type=jnp.float32)

    @pl.when(pl.program_id(2) == pl.num_programs(2) - 1)
    def _finalize():
        o_ref[...] = acc_ref[...].astype(o_ref.dtype)


def _matmul_kernel(x_ref, w_ref, o_ref, acc_ref):
    """Bias-free variant: no dead bias DMA stream / VPU add."""
    @pl.when(pl.program_id(2) == 0)
    def _init():
        acc_ref[...] = jnp.zeros_like(acc_ref)

    acc_ref[...] += jnp.dot(x_ref[...], w_ref[...],
                            preferred_element_type=jnp.float32)

    @pl.when(pl.program_id(2) == pl.num_programs(2) - 1)
    def _finalize():
        o_ref[...] = acc_ref[...].astype(o_ref.dtype)


@functools.partial(jax.jit, static_argnames=("use_bias",))
def linear_nd(xs, weight, bias=None, use_bias=True):
    """LinearND forward: treat last dim as hidden, apply Linear, reshape back.

    xs:     [..., in_size]
    weight: [in_size, out_size]   (pre-transposed vs. torch's [out, in])
    bias:   [out_size] or None
    """
    in_size = xs.shape[-1]
    out_size = weight.shape[-1]
    lead = xs.shape[:-1]
    m = 1
    for d in lead:
        m *= d

    out_dtype = xs.dtype
    if m == 0:
        # Empty leading dims: nothing to compute, don't launch a kernel.
        return jnp.zeros(lead + (out_size,), dtype=out_dtype)

    have_bias = bool(use_bias) and (bias is not None)

    # Tile sizes: shrink the generation-aware targets to the problem size.
    #   tm: multiple of 8 (sublane); tn, tk: multiples of 128 (lane / MXU).
    # Ragged M/N edges are handled by Pallas partial blocks (out-of-bounds
    # reads only feed discarded output positions), so no M/N padding and no
    # output slice -> no extra HBM round trips in the wrapper.
    tm = min(_TM, _round_up(m, 8))
    tn = min(_TN, _round_up(out_size, 128))
    tk = min(_TK, _round_up(in_size, 128))

    # K must be zero-padded to a tile multiple (garbage along the reduction dim
    # would corrupt valid outputs).  This is a no-op when in_size is already a
    # multiple of tk (the common case for model hidden sizes).
    # TODO(synk): in production, pre-pad / lay out the weight once at load time
    #             instead of per call (it is reused across calls).
    k_p = _round_up(in_size, tk)

    x2d = xs.reshape((m, in_size))
    w = weight
    if k_p != in_size:
        x2d = jnp.pad(x2d, ((0, 0), (0, k_p - in_size)))
        w = jnp.pad(w, ((0, k_p - in_size), (0, 0)))

    grid_m = pl.cdiv(m, tm)
    grid_n = pl.cdiv(out_size, tn)
    grid_k = k_p // tk
    grid = (grid_m, grid_n, grid_k)

    x_spec = pl.BlockSpec((tm, tk), lambda i, j, k: (i, k))
    # TODO(synk): for skinny-M (decode-like) shapes, pipeline_mode=pl.Buffered(3)
    #             on w_spec can hide exposed weight-DMA latency; sweep on HW.
    w_spec = pl.BlockSpec((tk, tn), lambda i, j, k: (k, j))
    o_spec = pl.BlockSpec((tm, tn), lambda i, j, k: (i, j))

    # Cost hint: under this schedule x is re-streamed grid_n times and w is
    # re-streamed grid_m times; flops counted over the padded tile extents.
    itemsize_x = x2d.dtype.itemsize
    itemsize_w = w.dtype.itemsize
    itemsize_o = jnp.dtype(out_dtype).itemsize
    cost = pl.CostEstimate(
        flops=2 * (grid_m * tm) * (grid_n * tn) * k_p,
        transcendentals=0,
        bytes_accessed=int(grid_n * x2d.size * itemsize_x
                           + grid_m * w.size * itemsize_w
                           + m * out_size * itemsize_o),
    )
    compiler_params = pltpu.CompilerParams(
        dimension_semantics=("parallel", "parallel", "arbitrary"),
        vmem_limit_bytes=_VMEM_LIMIT,
    )
    scratch = [pltpu.VMEM((tm, tn), jnp.float32)]
    out_shape = jax.ShapeDtypeStruct((m, out_size), out_dtype)

    # NOTE: if numerics allow, casting x2d / w to bf16 here (keeping the f32
    # accumulator and f32 bias) is the single largest compute-side lever on all
    # MXU generations; left off to preserve the module's f32 semantics.

    if have_bias:
        # Keep the bias in f32 so a bf16 input never truncates it before the
        # f32 accumulate.
        b2d = bias.reshape((1, out_size)).astype(jnp.float32)
        y2d = pl.pallas_call(
            _matmul_bias_kernel,
            out_shape=out_shape,
            grid=grid,
            in_specs=[x_spec, w_spec,
                      pl.BlockSpec((1, tn), lambda i, j, k: (0, j))],
            out_specs=o_spec,
            scratch_shapes=scratch,
            compiler_params=compiler_params,
            cost_estimate=cost,
        )(x2d, w, b2d)
    else:
        y2d = pl.pallas_call(
            _matmul_kernel,
            out_shape=out_shape,
            grid=grid,
            in_specs=[x_spec, w_spec],
            out_specs=o_spec,
            scratch_shapes=scratch,
            compiler_params=compiler_params,
            cost_estimate=cost,
        )(x2d, w)

    # Dropout with p=0 (module default / eval mode) is identity.
    return y2d.reshape(lead + (out_size,))


if __name__ == "__main__":
    # Small shapes consistent with the module: ND input with hidden last dim.
    batch, seq, in_size, out_size = 2, 8, 32, 64

    key = jax.random.PRNGKey(0)
    kx, kw, kb = jax.random.split(key, 3)

    x = jax.random.normal(kx, (batch, seq, in_size), dtype=jnp.float32)

    # Deterministic parameter init mimicking nn.Linear's uniform(-1/sqrt(in), 1/sqrt(in)).
    bound = 1.0 / (in_size ** 0.5)
    # Stored as [in_size, out_size] so the kernel does x @ W directly.
    weight = jax.random.uniform(kw, (in_size, out_size), dtype=jnp.float32,
                                minval=-bound, maxval=bound)
    bias = jax.random.uniform(kb, (out_size,), dtype=jnp.float32,
                              minval=-bound, maxval=bound)

    # With bias (default module config).
    y = jax.block_until_ready(linear_nd(x, weight, bias))
    y_ref = (x.reshape(-1, in_size) @ weight + bias).reshape(batch, seq, out_size)
    assert y.shape == (batch, seq, out_size)
    assert jnp.allclose(y, y_ref, atol=1e-5, rtol=1e-5)

    # Bias-free variant (bias=False in the module).
    y_nb = jax.block_until_ready(linear_nd(x, weight, use_bias=False))
    y_nb_ref = (x.reshape(-1, in_size) @ weight).reshape(batch, seq, out_size)
    assert jnp.allclose(y_nb, y_nb_ref, atol=1e-5, rtol=1e-5)

    print("KERNEL_OK")
</pallas_src>

<mosaic_0001>
module attributes {stable_mosaic.version = 11 : i64} {
  func.func @_matmul_bias_kernel(%arg0: i32, %arg1: i32, %arg2: i32, %arg3: memref<16x128xf32, #tpu.memory_space<vmem>>, %arg4: memref<128x128xf32, #tpu.memory_space<vmem>>, %arg5: memref<1x128xf32, #tpu.memory_space<vmem>>, %arg6: memref<16x128xf32, #tpu.memory_space<vmem>>, %arg7: memref<16x128xf32, #tpu.memory_space<vmem>>) attributes {dimension_semantics = [#tpu.dimension_semantics<parallel>, #tpu.dimension_semantics<parallel>, #tpu.dimension_semantics<arbitrary>], iteration_bounds = array<i64: 1, 1, 1>, scalar_prefetch = 0 : i64, scratch_operands = 1 : i64, tpu.core_type = #tpu.core_type<tc>, window_params = [{transform_indices = @transform_0, window_bounds = array<i64: 16, 128>}, {transform_indices = @transform_1, window_bounds = array<i64: 128, 128>}, {transform_indices = @transform_2, window_bounds = array<i64: 1, 128>}, {transform_indices = @transform_3, window_bounds = array<i64: 16, 128>}]} {
    %c0_i32 = arith.constant 0 : i32
    %0 = arith.cmpi eq, %arg2, %c0_i32 : i32
    %1 = arith.extui %0 : i1 to i32
    %c0_i32_0 = arith.constant 0 : i32
    %2 = arith.cmpi ne, %1, %c0_i32_0 : i32
    scf.if %2 {
      %c0_10 = arith.constant 0 : index
      %c0_11 = arith.constant 0 : index
      %12 = vector.load %arg5[%c0_10, %c0_11] : memref<1x128xf32, #tpu.memory_space<vmem>>, vector<1x128xf32>
      %13 = vector.shape_cast %12 : vector<1x128xf32> to vector<1x128xf32>
      %14 = vector.broadcast %13 : vector<1x128xf32> to vector<16x128xf32>
      %c0_12 = arith.constant 0 : index
      %c0_13 = arith.constant 0 : index
      %15 = vector.load %arg7[%c0_12, %c0_13] : memref<16x128xf32, #tpu.memory_space<vmem>>, vector<16x128xf32>
      tpu.vector_store %arg7[%c0_12, %c0_13], %14 {strides = array<i32>} : memref<16x128xf32, #tpu.memory_space<vmem>>, vector<16x128xf32>,
    } else {
    }
    %c0 = arith.constant 0 : index
    %c0_1 = arith.constant 0 : index
    %3 = vector.load %arg7[%c0, %c0_1] : memref<16x128xf32, #tpu.memory_space<vmem>>, vector<16x128xf32>
    %c0_2 = arith.constant 0 : index
    %c0_3 = arith.constant 0 : index
    %4 = vector.load %arg3[%c0_2, %c0_3] : memref<16x128xf32, #tpu.memory_space<vmem>>, vector<16x128xf32>
    %c0_4 = arith.constant 0 : index
    %c0_5 = arith.constant 0 : index
    %5 = vector.load %arg4[%c0_4, %c0_5] : memref<128x128xf32, #tpu.memory_space<vmem>>, vector<128x128xf32>
    %cst = arith.constant dense<0.000000e+00> : vector<16x128xf32>
    %6 = tpu.matmul %4, %5, %cst {dimension_numbers = #tpu.dot_dimension_numbers<[1], [0], [0], [1], [0, 0, 1, 1], [], []>} : vector<16x128xf32>, vector<128x128xf32>, vector<16x128xf32> -> vector<16x128xf32>
    %7 = arith.addf %3, %6 : vector<16x128xf32>
    %c0_6 = arith.constant 0 : index
    %c0_7 = arith.constant 0 : index
    %8 = vector.load %arg7[%c0_6, %c0_7] : memref<16x128xf32, #tpu.memory_space<vmem>>, vector<16x128xf32>
    tpu.vector_store %arg7[%c0_6, %c0_7], %7 {strides = array<i32>} : memref<16x128xf32, #tpu.memory_space<vmem>>, vector<16x128xf32>,
    %c0_i32_8 = arith.constant 0 : i32
    %9 = arith.cmpi eq, %arg2, %c0_i32_8 : i32
    %10 = arith.extui %9 : i1 to i32
    %c0_i32_9 = arith.constant 0 : i32
    %11 = arith.cmpi ne, %10, %c0_i32_9 : i32
    scf.if %11 {
      %c0_10 = arith.constant 0 : index
      %c0_11 = arith.constant 0 : index
      %12 = vector.load %arg7[%c0_10, %c0_11] : memref<16x128xf32, #tpu.memory_space<vmem>>, vector<16x128xf32>
      %c0_12 = arith.constant 0 : index
      %c0_13 = arith.constant 0 : index
      %13 = vector.load %arg6[%c0_12, %c0_13] : memref<16x128xf32, #tpu.memory_space<vmem>>, vector<16x128xf32>
      tpu.vector_store %arg6[%c0_12, %c0_13], %12 {strides = array<i32>} : memref<16x128xf32, #tpu.memory_space<vmem>>, vector<16x128xf32>,
    } else {
    }
    return
  }
  func.func @transform_0(%arg0: i32, %arg1: i32, %arg2: i32) -> (i32, i32) {
    %c0_i32 = arith.constant 0 : i32
    return %arg0, %arg2 : i32, i32
  }
  func.func @transform_1(%arg0: i32, %arg1: i32, %arg2: i32) -> (i32, i32) {
    %c0_i32 = arith.constant 0 : i32
    return %arg2, %arg1 : i32, i32
  }
  func.func @transform_2(%arg0: i32, %arg1: i32, %arg2: i32) -> (i32, i32) {
    %c0_i32 = arith.constant 0 : i32
    %c0_i32_0 = arith.constant 0 : i32
    return %c0_i32, %arg1 : i32, i32
  }
  func.func @transform_3(%arg0: i32, %arg1: i32, %arg2: i32) -> (i32, i32) {
    %c0_i32 = arith.constant 0 : i32
    return %arg0, %arg1 : i32, i32
  }
}

</mosaic_0001>

<bundles_post_ra>
// kernel: linear_nd.1
= control target key start
LH: loop header
LB: loop body
LE: loop exit
PB: predicated region body
PF: predicated region fallthrough
CT: control target
= control target key end

     0   :  { %s226_s0 = inlined_call_operand.vmem [shape: f32[16,128], index: 0, kind: input, shape index: {}]   ;;  %s227_s1 = inlined_call_operand.vmem [shape: f32[128,64], index: 1, kind: input, shape index: {}]   ;;  %s228_s2 = inlined_call_operand.vmem [shape: f32[1,64], index: 2, kind: input, shape index: {}]   ;;  %s229_s3 = inlined_call_operand.hbm [shape: f32[16,64], index: 3, kind: output, shape index: {}]  }
   0x1   :  { %v44_v0 = vld [vmem:[%s227_s1 + $0x78] sm:$0xff]  ;;  %v43_v1 = vld [vmem:[%s227_s1 + $0x70] sm:$0xff]  ;;  %v42_v2 = vld [vmem:[%s227_s1 + $0x68] sm:$0xff] }
   0x2   :  { %45 = vmatpush.msra.mxu0 %v44_v0  ;;  %97 = vmatpush.msra.mxu1 %v44_v0  ;;  %v41_v3 = vld [vmem:[%s227_s1 + $0x60] sm:$0xff]  ;;  %v40_v4 = vld [vmem:[%s227_s1 + $0x58] sm:$0xff] }
   0x4   :  { %46 = vmatpush.msra.mxu0 %v43_v1  ;;  %98 = vmatpush.msra.mxu1 %v43_v1 }
   0x6   :  { %47 = vmatpush.msra.mxu0 %v42_v2  ;;  %99 = vmatpush.msra.mxu1 %v42_v2 }
   0x7   :  { %8 = vsyncpa [#allocation4], 0  ;;  %v39_v5 = vld [vmem:[%s227_s1 + $0x50] sm:$0xff]  ;;  %v38_v6 = vld [vmem:[%s227_s1 + $0x48] sm:$0xff]  ;;  %s143_s23 = smov [#allocation3]   ;;  %s85_s26 = sshll.u32 %s229_s3, 4  ;;  %s86_s26 = int_to_ptr.hbm [resolvable:$true] %s85_s26 }
   0x8   :  { %48 = vmatpush.msra.mxu0 %v41_v3  ;;  %100 = vmatpush.msra.mxu1 %v41_v3  ;;  %v37_v7 = vld [vmem:[%s227_s1 + $0x40] sm:$0xff]  ;;  %v36_v8 = vld [vmem:[%s227_s1 + $0x38] sm:$0xff]  ;;  %v35_v9 = vld [vmem:[%s227_s1 + $0x30] sm:$0xff]  ;;  %s145_s27 = smov 8  }
   0x9   :  { %v34_v10 = vld [vmem:[%s227_s1 + $0x28] sm:$0xff]  ;;  %v33_v11 = vld [vmem:[%s227_s1 + $0x20] sm:$0xff]  ;;  %v32_v12 = vld [vmem:[%s227_s1 + $0x18] sm:$0xff] }
   0xa   :  { %49 = vmatpush.msra.mxu0 %v40_v4  ;;  %101 = vmatpush.msra.mxu1 %v40_v4  ;;  %v31_v13 = vld [vmem:[%s227_s1 + $0x10] sm:$0xff]  ;;  %v30_v14 = vld [vmem:[%s227_s1 + $0x8] sm:$0xff]  ;;  %v29_v15 = vld [vmem:[%s227_s1] sm:$0xff]  ;;  %s83_s1 = sshll.u32 %s143_s23, 4  ;;  %s84_s1 = int_to_ptr.vmem [resolvable:$true] %s83_s1 }
   0xb   :  { %v27_v16 = vld [vmem:[%s226_s0] sm:$0xff]  ;;  %v28_v17 = vld [vmem:[%s226_s0 + $0x8] sm:$0xff]  ;;  %s144_s0 = smov 128  }
   0xc   :  { %50 = vmatpush.msra.mxu0 %v39_v5  ;;  %102 = vmatpush.msra.mxu1 %v39_v5  ;;  %v116_v18 = vld [vmem:[%s228_s2] ss:$0 sm:$0xff] }
   0xe   :  { %51 = vmatpush.msra.mxu0 %v38_v6  ;;  %103 = vmatpush.msra.mxu1 %v38_v6 }
  0x10   :  { %52 = vmatpush.msra.mxu0 %v37_v7  ;;  %104 = vmatpush.msra.mxu1 %v37_v7 }
  0x12   :  { %53 = vmatpush.msra.mxu0 %v36_v8  ;;  %105 = vmatpush.msra.mxu1 %v36_v8 }
  0x14   :  { %54 = vmatpush.msra.mxu0 %v35_v9  ;;  %106 = vmatpush.msra.mxu1 %v35_v9 }
  0x16   :  { %55 = vmatpush.msra.mxu0 %v34_v10  ;;  %107 = vmatpush.msra.mxu1 %v34_v10 }
  0x18   :  { %56 = vmatpush.msra.mxu0 %v33_v11  ;;  %108 = vmatpush.msra.mxu1 %v33_v11 }
  0x1a   :  { %57 = vmatpush.msra.mxu0 %v32_v12  ;;  %109 = vmatpush.msra.mxu1 %v32_v12 }
  0x1c   :  { %58 = vmatpush.msra.mxu0 %v31_v13  ;;  %110 = vmatpush.msra.mxu1 %v31_v13 }
  0x1e   :  { %59 = vmatpush.msra.mxu0 %v30_v14  ;;  %111 = vmatpush.msra.mxu1 %v30_v14 }
  0x20   :  { %60 = vmatpush.msra.mxu0 %v29_v15  ;;  %112 = vmatpush.msra.mxu1 %v29_v15 }
  0x21   :  { %61 = vmatmul.f32.vlgmr.msra.gmra.mxu0 %v27_v16  ;;  %64 = vmatmul.f32.vlgmr.msra.gmra.mxu1 %v28_v17 }
  0x9e   :  { %v62_v19 = vpop.f32.mrf.mxu0  ;;  %v65_v20 = vpop.f32.mrf.mxu1 }
  0x9f   :  { %v68_v21 = vadd.f32 %v116_v18, %v62_v19  ;;  %v69_v22 = vadd.f32 %v116_v18, %v65_v20 }
  0xa1   :  { %77 = vst [vmem:[#allocation3] sm:$0xff] %v68_v21 }
  0xa2   :  { %78 = vst [vmem:[#allocation3 + $0x8] sm:$0xff] %v69_v22 }
  0xa3   :  { %91 = dma.vmem_to_hbm [thread:$0]  %s84_s1, 256, %s86_s26, [#allocation4], %s144_s0, %s144_s0, %s145_s27  }
  0xa4   :  { %141 = dma.done.wait [#allocation4], 256  }
  0xa5   :  { %142 = vsyncadd [#allocation4], 4294967040 }
  0xa6   :  { %96 = vsyncpa [#allocation4], 1 }

</bundles_post_ra>
